<compile_context>
chip_gen: v5e
topology: v5e:2x2
jax: 0.10.0
libtpu: 0.0.40
codegen_flags: <defaults>
</compile_context>

<pallas_src>
import functools

import jax
import jax.numpy as jnp
from jax.experimental import pallas as pl
from jax.experimental.pallas import tpu as pltpu


_MXU_MIN_C = 16          # channel count at/above which the MXU path is used
_MAX_TB = 8              # cap on batch rows folded into one block (bounds unrolling)


def _round_up(x, m):
    return (x + m - 1) // m * m


def _largest_divisor_leq(n, cap):
    cap = max(1, min(n, cap))
    for d in range(cap, 0, -1):
        if n % d == 0:
            return d
    return 1


def _target_block_bytes():
    """Per-streamed-block byte target, scaled by the chip's VMEM capacity."""
    try:
        cap = int(pltpu.get_tpu_info().vmem_capacity_bytes)
    except Exception:  # no device / API mismatch: assume the smallest VMEM (v7x: 64 MiB)
        cap = 64 * 1024 * 1024
    # ~4 MiB blocks on 128 MiB chips (v5e/v6e), ~2.5 MiB on 64 MiB chips (v7x).
    return (4 << 20) if cap >= (96 << 20) else (5 << 19)


# ---------------------------------------------------------------------------
# Pallas kernels: per-pixel channel mix  z[:, n] = W @ x[:, n]
# ---------------------------------------------------------------------------
def _mix_mxu_kernel(x_ref, w_ref, o_ref):
    """MXU path. x_ref/o_ref: (TB, C, TN); w_ref: (C, C) f32 VMEM (constant block)."""
    w = w_ref[...]                                   # fetched once (constant index_map)
    for bi in range(x_ref.shape[0]):
        x = x_ref[bi].astype(jnp.float32)            # (C, TN)
        y = jnp.dot(w, x, preferred_element_type=jnp.float32)
        o_ref[bi] = y.astype(o_ref.dtype)


def _mix_vpu_kernel(x_ref, w_ref, o_ref):
    """Small-C path: C*C scalar(SMEM) x vector FMAs, f32 accumulation.

    x_ref/o_ref: (TB, C, TN) or (TB, C, TS, 128) VMEM blocks; w_ref: (C, C) f32 SMEM.
    Works for padded tail blocks: the mix is per pixel column, so garbage lanes in
    the padded input only produce garbage in lanes whose stores Pallas masks out.
    """
    tb = x_ref.shape[0]
    c = x_ref.shape[1]
    for bi in range(tb):
        x = x_ref[bi].astype(jnp.float32)            # (C, TN) or (C, TS, 128)
        rows = []
        for co in range(c):
            acc = w_ref[co, 0] * x[0:1]              # scalar-from-SMEM * pixel slab
            for k in range(1, c):
                acc = acc + w_ref[co, k] * x[k:k + 1]
            rows.append(acc)
        o_ref[bi] = jnp.concatenate(rows, axis=0).astype(o_ref.dtype)


def _conv1x1_pallas(x3, w):
    """x3: (B, C, HW), w: (C, C) f32  ->  (B, C, HW) with out[b] = w @ x3[b]."""
    b, c, hw = x3.shape
    itemsize = x3.dtype.itemsize
    target = _target_block_bytes()
    use_mxu = c >= _MXU_MIN_C
    # Small-C path: put pixels on the (sublane, lane) = (8, 128) vreg tile so a
    # tiny / odd C never pads the sublane dim (C becomes an untiled leading dim).
    use_4d = (not use_mxu) and (hw % 128 == 0) and (hw // 128 >= 8)

    if use_4d:
        n_axis = hw // 128                            # pixel "strips" of 128 lanes
        min_tile = 8
        unit_bytes = c * 128 * itemsize               # one (C, 1, 128) strip
    else:
        n_axis = hw
        min_tile = 128
        unit_bytes = _round_up(c, 8) * itemsize       # one pixel column, sublane-padded
    row_bytes = _round_up(n_axis, min_tile) * unit_bytes

    if row_bytes <= target:                           # whole batch row fits: fold batch
        tile = n_axis
        tb_budget = max(1, target // row_bytes)
    else:
        tile = max(min_tile, (target // unit_bytes) // min_tile * min_tile)
        tb_budget = 1
    unroll_cap = _MAX_TB if use_mxu else max(1, 128 // (c * c))
    tb = _largest_divisor_leq(b, min(tb_budget, unroll_cap, _MAX_TB))

    # Keep at least 2 grid blocks when possible so both TensorCores of a dual-core
    # chip (v7x) get work under "parallel" dimension semantics.
    if (b // tb) * pl.cdiv(n_axis, tile) < 2:
        if b >= 2:
            tb = _largest_divisor_leq(b, max(1, tb // 2))
        elif n_axis > min_tile:
            cand = _round_up(pl.cdiv(n_axis, 2), min_tile)
            if cand < n_axis:
                tile = cand
    grid = (b // tb, pl.cdiv(n_axis, tile))

    if use_4d:
        x_in = x3.reshape(b, c, n_axis, 128)          # free view of contiguous NCHW
        block = (tb, c, tile, 128)
        imap = lambda i, j: (i, 0, j, 0)
        blk_bytes = tb * c * _round_up(tile, 8) * 128 * itemsize
    else:
        x_in = x3
        block = (tb, c, tile)
        imap = lambda i, j: (i, 0, j)
        blk_bytes = tb * _round_up(c, 8) * _round_up(tile, 128) * itemsize

    if use_mxu:
        kernel = _mix_mxu_kernel
        w_spec = pl.BlockSpec((c, c), lambda i, j: (0, 0))     # constant -> fetched once
        w_vmem = 2 * _round_up(c, 8) * _round_up(c, 128) * 4
    else:
        kernel = _mix_vpu_kernel
        # Tiny weight matrix goes to SMEM: the kernel reads w[c, k] as scalars and
        # issues scalar x vector FMAs (no lane/sublane broadcast filler, no vreg
        # pressure from column-slice temporaries as the tile grows).
        w_spec = pl.BlockSpec(memory_space=pltpu.MemorySpace.SMEM)
        w_vmem = 0

    # in + out double-buffered (+ padded layout) + once-fetched weight + slack.
    vmem_need = 4 * blk_bytes + w_vmem + (4 << 20)
    vmem_limit = int(min(max(vmem_need, 8 << 20), 48 << 20))

    cost = pl.CostEstimate(
        flops=2 * b * c * c * hw,
        bytes_accessed=2 * b * c * hw * itemsize + c * c * 4,
        transcendentals=0,
    )

    out = pl.pallas_call(
        kernel,
        out_shape=jax.ShapeDtypeStruct(x_in.shape, x_in.dtype),
        grid_spec=pltpu.PrefetchScalarGridSpec(
            num_scalar_prefetch=0,
            grid=grid,
            in_specs=[pl.BlockSpec(block, imap), w_spec],
            out_specs=pl.BlockSpec(block, imap),
        ),
        compiler_params=pltpu.CompilerParams(
            dimension_semantics=("parallel", "parallel"),
            vmem_limit_bytes=vmem_limit,
        ),
        cost_estimate=cost,
    )(x_in, w.astype(jnp.float32))                    # W stays float32 (accuracy)
    return out.reshape(b, c, hw)


# ---------------------------------------------------------------------------
# LU-parameterized weight assembly (plain-JAX glue, tiny CxC work)
# ---------------------------------------------------------------------------
def _get_weight(params, n_pixels, rev):
    lower = params["lower"] * params["l_mask"] + params["eye"]
    u = (params["upper"] * params["l_mask"].T
         + jnp.diag(params["sign_s"] * jnp.exp(params["log_s"])))
    dlogdet = jnp.sum(params["log_s"]) * n_pixels
    if not rev:
        weight = params["p"] @ (lower @ u)
    else:
        # W^-1 = U^-1 L^-1 P^-1 with P^-1 = P^T; triangular solves are exact and
        # better conditioned than jnp.linalg.inv on the factors.
        rhs = jax.scipy.linalg.solve_triangular(
            lower, params["p"].T, lower=True, unit_diagonal=True)
        weight = jax.scipy.linalg.solve_triangular(u, rhs, lower=False)
    return weight, dlogdet


@functools.partial(jax.jit, static_argnums=(3,))
def _invconv_forward(params, x, logdet, rev):
    b, c, h, w = x.shape
    weight, dlogdet = _get_weight(params, h * w, rev)
    z3 = _conv1x1_pallas(x.reshape(b, c, h * w), weight)
    z = z3.reshape(b, c, h, w)
    logdet = logdet - dlogdet if rev else logdet + dlogdet
    return z, logdet


class InvConvLU1x1:
    """JAX/Pallas port of the LU-parameterized invertible 1x1 convolution."""

    def __init__(self, in_ch, key):
        w_init = jnp.linalg.qr(
            jax.random.normal(key, (in_ch, in_ch), dtype=jnp.float32))[0]
        p, lower, upper = jax.scipy.linalg.lu(w_init)
        s = jnp.diag(upper)
        self.params = {
            "p": p.astype(jnp.float32),
            "lower": lower.astype(jnp.float32),
            "upper": jnp.triu(upper, 1).astype(jnp.float32),
            "sign_s": jnp.sign(s).astype(jnp.float32),
            "log_s": jnp.log(jnp.abs(s)).astype(jnp.float32),
            "l_mask": jnp.tril(jnp.ones((in_ch, in_ch), jnp.float32), -1),
            "eye": jnp.eye(in_ch, dtype=jnp.float32),
        }
        self.in_ch = in_ch

    def forward(self, x, logdet=None, rev=False):
        logdet = (jnp.asarray(0.0, jnp.float32) if logdet is None
                  else jnp.asarray(logdet, jnp.float32))
        return _invconv_forward(self.params, x, logdet, bool(rev))


if __name__ == "__main__":
    key = jax.random.PRNGKey(0)

    # Shapes chosen to exercise all three kernel paths:
    #   (2, 4, 16, 16) -> small-C VPU path, (TB, C, TN) blocks
    #   (1, 4, 32, 32) -> small-C VPU path, padding-free (TB, C, TS, 128) blocks
    #   (2, 32, 8, 8)  -> MXU path
    shapes = [(2, 4, 16, 16), (1, 4, 32, 32), (2, 32, 8, 8)]
    for idx, (B, C, H, W) in enumerate(shapes):
        k_w, k_x = jax.random.split(jax.random.fold_in(key, idx))
        module = InvConvLU1x1(C, k_w)
        x = jax.random.normal(k_x, (B, C, H, W), dtype=jnp.float32)

        z, logdet = module.forward(x, logdet=None, rev=False)
        z = jax.block_until_ready(z)
        logdet = jax.block_until_ready(logdet)

        # Reference: 1x1 conv == per-pixel matmul with the assembled P@L@U weight.
        w_fwd, dlogdet_ref = _get_weight(module.params, H * W, rev=False)
        z_ref = jnp.einsum("oc,bchw->bohw", w_fwd, x)
        assert jnp.allclose(z, z_ref, atol=2e-3, rtol=2e-3), f"forward mismatch {B,C,H,W}"
        assert jnp.allclose(logdet, dlogdet_ref, atol=1e-3, rtol=1e-4)

        # Round trip: reverse pass applies W^{-1} via the LU factors, removes dlogdet.
        x_back, logdet_back = module.forward(z, logdet=logdet, rev=True)
        x_back = jax.block_until_ready(x_back)
        assert jnp.allclose(x_back, x, atol=2e-3, rtol=2e-3), f"roundtrip mismatch {B,C,H,W}"
        assert jnp.allclose(logdet_back, 0.0, atol=1e-2)

    print("KERNEL_OK")
</pallas_src>

<mosaic_0001>
module attributes {stable_mosaic.version = 11 : i64} {
  func.func @_mix_vpu_kernel(%arg0: i32, %arg1: i32, %arg2: memref<1x4x256xf32, #tpu.memory_space<vmem>>, %arg3: memref<4x4xf32, #tpu.memory_space<smem>>, %arg4: memref<1x4x256xf32, #tpu.memory_space<vmem>>) attributes {dimension_semantics = [#tpu.dimension_semantics<parallel>, #tpu.dimension_semantics<parallel>], iteration_bounds = array<i64: 2, 1>, scalar_prefetch = 0 : i64, scratch_operands = 0 : i64, tpu.core_type = #tpu.core_type<tc>, window_params = [{transform_indices = @transform_0, window_bounds = array<i64: 1, 4, 256>}, {transform_indices = @transform_1, window_bounds = array<i64: 4, 4>}, {transform_indices = @transform_2, window_bounds = array<i64: 1, 4, 256>}]} {
    %c0 = arith.constant 0 : index
    %c0_0 = arith.constant 0 : index
    %c0_1 = arith.constant 0 : index
    %0 = vector.load %arg2[%c0, %c0_0, %c0_1] : memref<1x4x256xf32, #tpu.memory_space<vmem>>, vector<1x4x256xf32>
    %1 = vector.shape_cast %0 : vector<1x4x256xf32> to vector<4x256xf32>
    %c0_2 = arith.constant 0 : index
    %c0_3 = arith.constant 0 : index
    %2 = memref.load %arg3[%c0_2, %c0_3] : memref<4x4xf32, #tpu.memory_space<smem>>
    %3 = vector.extract_strided_slice %1 {offsets = [0, 0], sizes = [1, 256], strides = [1, 1]} : vector<4x256xf32> to vector<1x256xf32>
    %4 = vector.broadcast %2 : f32 to vector<1x256xf32>
    %5 = arith.mulf %4, %3 : vector<1x256xf32>
    %c0_4 = arith.constant 0 : index
    %c1 = arith.constant 1 : index
    %6 = memref.load %arg3[%c0_4, %c1] : memref<4x4xf32, #tpu.memory_space<smem>>
    %7 = vector.extract_strided_slice %1 {offsets = [1, 0], sizes = [1, 256], strides = [1, 1]} : vector<4x256xf32> to vector<1x256xf32>
    %8 = vector.broadcast %6 : f32 to vector<1x256xf32>
    %9 = arith.mulf %8, %7 : vector<1x256xf32>
    %10 = arith.addf %5, %9 : vector<1x256xf32>
    %c0_5 = arith.constant 0 : index
    %c2 = arith.constant 2 : index
    %11 = memref.load %arg3[%c0_5, %c2] : memref<4x4xf32, #tpu.memory_space<smem>>
    %12 = vector.extract_strided_slice %1 {offsets = [2, 0], sizes = [1, 256], strides = [1, 1]} : vector<4x256xf32> to vector<1x256xf32>
    %13 = vector.broadcast %11 : f32 to vector<1x256xf32>
    %14 = arith.mulf %13, %12 : vector<1x256xf32>
    %15 = arith.addf %10, %14 : vector<1x256xf32>
    %c0_6 = arith.constant 0 : index
    %c3 = arith.constant 3 : index
    %16 = memref.load %arg3[%c0_6, %c3] : memref<4x4xf32, #tpu.memory_space<smem>>
    %17 = vector.extract_strided_slice %1 {offsets = [3, 0], sizes = [1, 256], strides = [1, 1]} : vector<4x256xf32> to vector<1x256xf32>
    %18 = vector.broadcast %16 : f32 to vector<1x256xf32>
    %19 = arith.mulf %18, %17 : vector<1x256xf32>
    %20 = arith.addf %15, %19 : vector<1x256xf32>
    %c1_7 = arith.constant 1 : index
    %c0_8 = arith.constant 0 : index
    %21 = memref.load %arg3[%c1_7, %c0_8] : memref<4x4xf32, #tpu.memory_space<smem>>
    %22 = vector.extract_strided_slice %1 {offsets = [0, 0], sizes = [1, 256], strides = [1, 1]} : vector<4x256xf32> to vector<1x256xf32>
    %23 = vector.broadcast %21 : f32 to vector<1x256xf32>
    %24 = arith.mulf %23, %22 : vector<1x256xf32>
    %c1_9 = arith.constant 1 : index
    %c1_10 = arith.constant 1 : index
    %25 = memref.load %arg3[%c1_9, %c1_10] : memref<4x4xf32, #tpu.memory_space<smem>>
    %26 = vector.extract_strided_slice %1 {offsets = [1, 0], sizes = [1, 256], strides = [1, 1]} : vector<4x256xf32> to vector<1x256xf32>
    %27 = vector.broadcast %25 : f32 to vector<1x256xf32>
    %28 = arith.mulf %27, %26 : vector<1x256xf32>
    %29 = arith.addf %24, %28 : vector<1x256xf32>
    %c1_11 = arith.constant 1 : index
    %c2_12 = arith.constant 2 : index
    %30 = memref.load %arg3[%c1_11, %c2_12] : memref<4x4xf32, #tpu.memory_space<smem>>
    %31 = vector.extract_strided_slice %1 {offsets = [2, 0], sizes = [1, 256], strides = [1, 1]} : vector<4x256xf32> to vector<1x256xf32>
    %32 = vector.broadcast %30 : f32 to vector<1x256xf32>
    %33 = arith.mulf %32, %31 : vector<1x256xf32>
    %34 = arith.addf %29, %33 : vector<1x256xf32>
    %c1_13 = arith.constant 1 : index
    %c3_14 = arith.constant 3 : index
    %35 = memref.load %arg3[%c1_13, %c3_14] : memref<4x4xf32, #tpu.memory_space<smem>>
    %36 = vector.extract_strided_slice %1 {offsets = [3, 0], sizes = [1, 256], strides = [1, 1]} : vector<4x256xf32> to vector<1x256xf32>
    %37 = vector.broadcast %35 : f32 to vector<1x256xf32>
    %38 = arith.mulf %37, %36 : vector<1x256xf32>
    %39 = arith.addf %34, %38 : vector<1x256xf32>
    %c2_15 = arith.constant 2 : index
    %c0_16 = arith.constant 0 : index
    %40 = memref.load %arg3[%c2_15, %c0_16] : memref<4x4xf32, #tpu.memory_space<smem>>
    %41 = vector.extract_strided_slice %1 {offsets = [0, 0], sizes = [1, 256], strides = [1, 1]} : vector<4x256xf32> to vector<1x256xf32>
    %42 = vector.broadcast %40 : f32 to vector<1x256xf32>
    %43 = arith.mulf %42, %41 : vector<1x256xf32>
    %c2_17 = arith.constant 2 : index
    %c1_18 = arith.constant 1 : index
    %44 = memref.load %arg3[%c2_17, %c1_18] : memref<4x4xf32, #tpu.memory_space<smem>>
    %45 = vector.extract_strided_slice %1 {offsets = [1, 0], sizes = [1, 256], strides = [1, 1]} : vector<4x256xf32> to vector<1x256xf32>
    %46 = vector.broadcast %44 : f32 to vector<1x256xf32>
    %47 = arith.mulf %46, %45 : vector<1x256xf32>
    %48 = arith.addf %43, %47 : vector<1x256xf32>
    %c2_19 = arith.constant 2 : index
    %c2_20 = arith.constant 2 : index
    %49 = memref.load %arg3[%c2_19, %c2_20] : memref<4x4xf32, #tpu.memory_space<smem>>
    %50 = vector.extract_strided_slice %1 {offsets = [2, 0], sizes = [1, 256], strides = [1, 1]} : vector<4x256xf32> to vector<1x256xf32>
    %51 = vector.broadcast %49 : f32 to vector<1x256xf32>
    %52 = arith.mulf %51, %50 : vector<1x256xf32>
    %53 = arith.addf %48, %52 : vector<1x256xf32>
    %c2_21 = arith.constant 2 : index
    %c3_22 = arith.constant 3 : index
    %54 = memref.load %arg3[%c2_21, %c3_22] : memref<4x4xf32, #tpu.memory_space<smem>>
    %55 = vector.extract_strided_slice %1 {offsets = [3, 0], sizes = [1, 256], strides = [1, 1]} : vector<4x256xf32> to vector<1x256xf32>
    %56 = vector.broadcast %54 : f32 to vector<1x256xf32>
    %57 = arith.mulf %56, %55 : vector<1x256xf32>
    %58 = arith.addf %53, %57 : vector<1x256xf32>
    %c3_23 = arith.constant 3 : index
    %c0_24 = arith.constant 0 : index
    %59 = memref.load %arg3[%c3_23, %c0_24] : memref<4x4xf32, #tpu.memory_space<smem>>
    %60 = vector.extract_strided_slice %1 {offsets = [0, 0], sizes = [1, 256], strides = [1, 1]} : vector<4x256xf32> to vector<1x256xf32>
    %61 = vector.broadcast %59 : f32 to vector<1x256xf32>
    %62 = arith.mulf %61, %60 : vector<1x256xf32>
    %c3_25 = arith.constant 3 : index
    %c1_26 = arith.constant 1 : index
    %63 = memref.load %arg3[%c3_25, %c1_26] : memref<4x4xf32, #tpu.memory_space<smem>>
    %64 = vector.extract_strided_slice %1 {offsets = [1, 0], sizes = [1, 256], strides = [1, 1]} : vector<4x256xf32> to vector<1x256xf32>
    %65 = vector.broadcast %63 : f32 to vector<1x256xf32>
    %66 = arith.mulf %65, %64 : vector<1x256xf32>
    %67 = arith.addf %62, %66 : vector<1x256xf32>
    %c3_27 = arith.constant 3 : index
    %c2_28 = arith.constant 2 : index
    %68 = memref.load %arg3[%c3_27, %c2_28] : memref<4x4xf32, #tpu.memory_space<smem>>
    %69 = vector.extract_strided_slice %1 {offsets = [2, 0], sizes = [1, 256], strides = [1, 1]} : vector<4x256xf32> to vector<1x256xf32>
    %70 = vector.broadcast %68 : f32 to vector<1x256xf32>
    %71 = arith.mulf %70, %69 : vector<1x256xf32>
    %72 = arith.addf %67, %71 : vector<1x256xf32>
    %c3_29 = arith.constant 3 : index
    %c3_30 = arith.constant 3 : index
    %73 = memref.load %arg3[%c3_29, %c3_30] : memref<4x4xf32, #tpu.memory_space<smem>>
    %74 = vector.extract_strided_slice %1 {offsets = [3, 0], sizes = [1, 256], strides = [1, 1]} : vector<4x256xf32> to vector<1x256xf32>
    %75 = vector.broadcast %73 : f32 to vector<1x256xf32>
    %76 = arith.mulf %75, %74 : vector<1x256xf32>
    %77 = arith.addf %72, %76 : vector<1x256xf32>
    %78 = tpu.concatenate %20, %39, %58, %77 in 0 : vector<1x256xf32>, vector<1x256xf32>, vector<1x256xf32>, vector<1x256xf32> -> vector<4x256xf32>
    %c0_31 = arith.constant 0 : index
    %c0_32 = arith.constant 0 : index
    %c0_33 = arith.constant 0 : index
    %79 = vector.load %arg4[%c0_31, %c0_32, %c0_33] : memref<1x4x256xf32, #tpu.memory_space<vmem>>, vector<1x4x256xf32>
    %80 = vector.shape_cast %79 : vector<1x4x256xf32> to vector<4x256xf32>
    %81 = vector.shape_cast %78 : vector<4x256xf32> to vector<1x4x256xf32>
    tpu.vector_store %arg4[%c0_31, %c0_32, %c0_33], %81 {strides = array<i32>} : memref<1x4x256xf32, #tpu.memory_space<vmem>>, vector<1x4x256xf32>,
    return
  }
  func.func @transform_0(%arg0: i32, %arg1: i32) -> (i32, i32, i32) {
    %c0_i32 = arith.constant 0 : i32
    %c0_i32_0 = arith.constant 0 : i32
    return %arg0, %c0_i32, %arg1 : i32, i32, i32
  }
  func.func @transform_1(%arg0: i32, %arg1: i32) -> (i32, i32) {
    %c0_i32 = arith.constant 0 : i32
    %c0_i32_0 = arith.constant 0 : i32
    %c0_i32_1 = arith.constant 0 : i32
    return %c0_i32, %c0_i32_0 : i32, i32
  }
  func.func @transform_2(%arg0: i32, %arg1: i32) -> (i32, i32, i32) {
    %c0_i32 = arith.constant 0 : i32
    %c0_i32_0 = arith.constant 0 : i32
    return %arg0, %c0_i32, %arg1 : i32, i32, i32
  }
}

</mosaic_0001>

<bundles_post_ra>
// kernel: _invconv_forward.1
= control target key start
LH: loop header
LB: loop body
LE: loop exit
PB: predicated region body
PF: predicated region fallthrough
CT: control target
= control target key end

     0   :  { %7 = vsyncpa [#allocation3], 0  ;;  %s577_s9 = smov 0   ;;  %s579_s10 = smov 0   ;;  %s639_s0 = inlined_call_operand.vmem [shape: f32[2,4,256], index: 0, kind: input, shape index: {}]   ;;  %s640_s1 = inlined_call_operand.vmem [shape: f32[4,4], index: 1, kind: input, shape index: {}]   ;;  %s641_s2 = inlined_call_operand.vmem [shape: f32[2,4,256], index: 2, kind: output, shape index: {}]  }
   0x1   :  { %s581_s11 = smov 0  }
   0x2 LB: > { %s441_s12 = sadd.s32 4294967295, %s559_s11   ;;  %s25_s13 = sadd.s32 1, %s555_s10  ;;  %s559_s11 = sphi %s581_s11, %s13_s11   ;;  %s555_s10 = sphi %s579_s10, %s643_s10   ;;  %s551_s9 = sphi %s577_s9, %s642_s9  }
   0x3   : > { %p27_p0 = scmp.ge.s32.totalorder %s25_s13, 2  ;;  %p443_p1 = scmp.ge.s32.totalorder %s559_s11, 1 }
   0x4   : > { %p107_p2 = scmp.lt.s32.totalorder %s559_s11, 3  ;;  %p491_p4 = scmp.eq.s32.totalorder %s441_s12, 0 }
   0x5   : > { %s645_s13 = smov (%p27_p0, %s25_s13), 0  ;;  %s119_s16 = sshll.u32 %s640_s1, 4  ;;  %s120_s16 = int_to_ptr.vmem [resolvable:$true] %s119_s16 }
   0x6   : > { %p108_p3 = pnand %p443_p1, %p107_p2  ;;  %s561_s17 = smov [#allocation2]  }
   0x8   : > { %p487_p5 = pneg %p108_p3  ;;  %145 = sbr.rel (%p108_p3) target bundleno = 53 (0x35), region = 28 }
   0xa   : > { %p488_p6 = pnand %p491_p4, %p487_p5 }
   0xc   : > { %490 = dma.vmem_to_smem (!%p488_p6), %s120_s16, 64, %s561_s17, [#allocation3]  }
   0xd   : > { %546 = dma.done.wait (%p491_p4), [#allocation3], 64  }
   0xe   : > { %548 = vsyncadd (%p491_p4), [#allocation3], 4294967232 }
   0xf   : > { %152 = sfence }
  0x10   : > { %p178_p7 = scmp.lt.s32.totalorder %s551_s9, 1  ;;  %s198_s18 = sld [smem:[#allocation2]]  ;;  %vm326_vm0 = vcmask 1040384   ;;  %vm329_vm1 = vcmask 1041408   ;;  %vm332_vm2 = vcmask 1042432   ;;  %vm338_vm3 = vcmask 1043456  }
  0x11   : > { %s452_s19 = sld [smem:[#allocation2 + $0x1]] }
  0x12   : > { %s647_s9 = smov (!%p178_p7, %s551_s9), 1  ;;  %s454_s20 = sld [smem:[#allocation2 + $0x2]] }
  0x13   : > { %s481_s21 = sshll.u32 %s647_s9, 3  ;;  %s456_s22 = sld [smem:[#allocation2 + $0x3]] }
  0x14   : > { %s185_s25 = scalar_lea.vmem %s639_s0, %s481_s21  ;;  %s458_s26 = sld [smem:[#allocation2 + $0x80]] }
  0x15   : > { %v607_v0 = vld [vmem:[%s185_s25] sm:$0xff]  ;;  %s459_s27 = sld [smem:[#allocation2 + $0x81]]  ;;  %s195_s16 = scalar_lea.vmem %s641_s2, %s481_s21 }
  0x16   : > { %v199_v1 = vstv %s198_s18  ;;  %s461_s28 = sld [smem:[#allocation2 + $0x82]] }
  0x17   : > { %v202_v2 = vstv %s452_s19  ;;  %v200_v3 = vmul.f32 %v199_v1, %v607_v0  ;;  %s463_s29 = sld [smem:[#allocation2 + $0x83]] }
  0x18   : > { %v203_v4 = vmul.f32 %v202_v2, %v607_v0  ;;  %v210_v5 = vstv %s454_s20  ;;  %s465_s30 = sld [smem:[#allocation2 + $0x100]] }
  0x19   : > { %v211_v7 = vmul.f32 %v210_v5, %v607_v0  ;;  %v218_v8 = vstv %s456_s22  ;;  %s466_s3 = sld [smem:[#allocation2 + $0x101]] }
  0x1a   : > { %v453_v6 = vrot.slane %v203_v4, 9  ;;  %v219_v9 = vmul.f32 %v218_v8, %v607_v0  ;;  %v226_v12 = vstv %s458_s26  ;;  %s468_s4 = sld [smem:[#allocation2 + $0x102]] }
  0x1b   : > { %v455_v11 = vrot.slane %v211_v7, 10  ;;  %v229_v13 = vstv %s459_s27  ;;  %s470_s5 = sld [smem:[#allocation2 + $0x103]]  ;;  %v227_v14 = vmul.f32 %v226_v12, %v607_v0 }
  0x1c   : > { %v208_v10 = vadd.f32 %v453_v6, %v200_v3  ;;  %v230_v15 = vmul.f32 %v229_v13, %v607_v0  ;;  %v237_v16 = vstv %s461_s28  ;;  %s472_s6 = sld [smem:[#allocation2 + $0x180]]  ;;  %v457_v18 = vrot.slane %v219_v9, 11 }
  0x1d   : > { %v238_v19 = vmul.f32 %v237_v16, %v607_v0  ;;  %v245_v20 = vstv %s463_s29  ;;  %s473_s7 = sld [smem:[#allocation2 + $0x181]] }
  0x1e   : > { %v216_v17 = vadd.f32 %v455_v11, %v208_v10  ;;  %v460_v21 = vrot.slane %v230_v15, 9  ;;  %v246_v22 = vmul.f32 %v245_v20, %v607_v0  ;;  %v253_v23 = vstv %s465_s30  ;;  %s475_s8 = sld [smem:[#allocation2 + $0x182]] }
  0x1f   : > { %v462_v24 = vrot.slane %v238_v19, 10  ;;  %v254_v25 = vmul.f32 %v253_v23, %v607_v0  ;;  %v256_v26 = vstv %s466_s3  ;;  %s477_s12 = sld [smem:[#allocation2 + $0x183]] }
  0x20   : > { %v235_v27 = vadd.f32 %v460_v21, %v227_v14  ;;  %v464_v28 = vrot.slane %v246_v22, 11  ;;  %v257_v29 = vmul.f32 %v256_v26, %v607_v0  ;;  %v264_v30 = vstv %s468_s4 }
  0x21   : > { %v224_v31 = vadd.f32 %v457_v18, %v216_v17  ;;  %v265_v32 = vmul.f32 %v264_v30, %v607_v0  ;;  %v272_v33 = vstv %s470_s5 }
  0x22   : > { %v243_v34 = vadd.f32 %v462_v24, %v235_v27  ;;  %v467_v35 = vrot.slane %v257_v29, 9  ;;  %v273_v36 = vmul.f32 %v272_v33, %v607_v0  ;;  %v280_v37 = vstv %s472_s6 }
  0x23   : > { %v469_v38 = vrot.slane %v265_v32, 10  ;;  %v281_v39 = vmul.f32 %v280_v37, %v607_v0  ;;  %v283_v40 = vstv %s473_s7  ;;  %v307_v47 = vperm.slane %v224_v31, 0 }
  0x24   : > { %v251_v41 = vadd.f32 %v464_v28, %v243_v34  ;;  %v262_v42 = vadd.f32 %v467_v35, %v254_v25  ;;  %v471_v43 = vrot.slane %v273_v36, 11  ;;  %v284_v44 = vmul.f32 %v283_v40, %v607_v0 }
  0x25   : > { %v291_v45 = vstv %s475_s8  ;;  %v299_v46 = vstv %s477_s12  ;;  %v308_v48 = vperm.slane %v224_v31, 4 }
  0x26   : > { %v270_v49 = vadd.f32 %v469_v38, %v262_v42  ;;  %v474_v50 = vrot.slane %v284_v44, 9  ;;  %v292_v51 = vmul.f32 %v291_v45, %v607_v0  ;;  %v300_v52 = vmul.f32 %v299_v46, %v607_v0 }
  0x27   : > { %v312_v53 = vperm.slane %v251_v41, 0  ;;  %v313_v54 = vperm.slane %v251_v41, 4 }
  0x28   : > { %v278_v55 = vadd.f32 %v471_v43, %v270_v49  ;;  %v289_v56 = vadd.f32 %v474_v50, %v281_v39  ;;  %v476_v57 = vrot.slane %v292_v51, 10  ;;  %v478_v58 = vrot.slane %v300_v52, 11 }
  0x29   : > { %v327_v59 = vsel %vm326_vm0, %v307_v47, %v312_v53  ;;  %v328_v63 = vsel %vm326_vm0, %v308_v48, %v313_v54 }
  0x2a   : > { %v297_v60 = vadd.f32 %v476_v57, %v289_v56  ;;  %v317_v61 = vperm.slane %v278_v55, 0  ;;  %v318_v62 = vperm.slane %v278_v55, 4 }
  0x2c   : > { %v305_v1 = vadd.f32 %v478_v58, %v297_v60  ;;  %v330_v2 = vsel %vm329_vm1, %v327_v59, %v317_v61  ;;  %v331_v3 = vsel %vm329_vm1, %v328_v63, %v318_v62 }
  0x2e   : > { %v322_v4 = vperm.slane %v305_v1, 0  ;;  %v323_v0 = vperm.slane %v305_v1, 4 }
  0x30   : > { %v333_v5 = vsel %vm332_vm2, %v330_v2, %v322_v4  ;;  %v334_v6 = vsel %vm332_vm2, %v331_v3, %v323_v0 }
  0x31   : > { %v337_v7 = vrot.slane %v334_v6, 4 }
  0x33   : > { %v339_v8 = vsel %vm338_vm3, %v333_v5, %v337_v7 }
  0x34   : > { %341 = vst [vmem:[%s195_s16] sm:$0xff] %v339_v8 }
  0x35 PF: > { %s13_s11 = sadd.s32 1, %s559_s11   ;;  %s642_s9 = smov %s555_s10 }
  0x36   : > { %p10_p8 = scmp.ge.s32.totalorder %s13_s11, 4   ;;  %s643_s10 = smov %s645_s13 }
  0x38   :  { %12 = sbr.rel (!%p10_p8) target bundleno = 2 (0x2), region = 63 }
  0x3d   :  { %372 = vsyncpa [#allocation3], 1 }
  0x3e   :  { %374 = vsyncpa [#allocation3 + $0x1], 1 }

</bundles_post_ra>
